<compile_context>
chip_gen: v7x
topology: tpu7x:2x2x1
jax: 0.10.0
libtpu: 0.0.40
codegen_flags: <defaults>
</compile_context>

<pallas_src>
import jax
import jax.numpy as jnp
from jax import lax
from jax.experimental import pallas as pl
from jax.experimental.pallas import tpu as pltpu

EPS = 1e-5
MXU_DTYPE = jnp.bfloat16   # bf16 operands feed the MXU at peak; accumulation stays f32


def _subnet2conv_kernel(x_ref, up_ref, dn_ref, w1_ref, w2_ref,
                        g1_ref, bt1_ref, g2_ref, bt2_ref, s_ref, out_ref):
    """Fused conv3x3 -> BN -> ReLU -> conv3x3 -> BN -> ReLU, lane-dense layout.

    x_ref     : (N*H, W*Cin)        f32  image rows, channels fused into lanes
    up/dn_ref : (N*H, 1)            f32  1.0 where row h-1 / h+1 exists inside the same image
    w1_ref    : (3*W*Cin,  W*Cout)  bf16 K-stacked banded conv weights (kh = 0,1,2 blocks)
    w2_ref    : (3*W*Cout, W*Cout)  bf16
    g*/bt*    : (1, W*Cout)         f32  BN gamma / beta, lane-tiled
    s_ref     : (W*Cout, W*Cout)    f32  channel-group sum+broadcast matrix, pre-scaled by 1/(N*H*W)
    out_ref   : (N*H, W*Cout)       f32
    """
    m = x_ref.shape[0]          # N * H rows
    up = up_ref[...]            # (m, 1) masks; broadcast along lanes below
    dn = dn_ref[...]
    s_mat = s_ref[...]

    def conv3x3(src, w_ref):
        # Row taps via XLU sublane rotation; image-boundary rows (incl. the wrapped row)
        # are zeroed by the per-row mask.
        up_tap = pltpu.roll(src, 1, axis=0) * up        # row r-1  (kernel row kh = 0)
        dn_tap = pltpu.roll(src, m - 1, axis=0) * dn    # row r+1  (kernel row kh = 2)
        # Fuse the three taps along the contraction dim -> one bf16 cast, one MXU matmul,
        # one result drain (K = 3*W*Cin per layer; the column taps / Cin contraction / W
        # zero-padding are already folded into the banded weights).
        k_fused = jnp.concatenate([up_tap, src, dn_tap], axis=1).astype(MXU_DTYPE)
        return jnp.dot(k_fused, w_ref[...], preferred_element_type=jnp.float32)

    def bn_relu(y, gamma, beta):
        # Training-mode BatchNorm2d (biased batch stats, two-pass variance) + ReLU.
        # Per-channel sums over the fused W*C lane axis are reduced and re-broadcast with
        # one tiny matmul against s_mat (which already carries 1/(N*H*W)), staying lane-dense.
        mean = jnp.dot(jnp.sum(y, axis=0, keepdims=True), s_mat,
                       preferred_element_type=jnp.float32)
        d = y - mean
        var = jnp.dot(jnp.sum(d * d, axis=0, keepdims=True), s_mat,
                      preferred_element_type=jnp.float32)
        scale = lax.rsqrt(var + EPS) * gamma            # (1, W*C) row-level math only
        return jnp.maximum(d * scale + beta, 0.0)

    # Note: conv biases are intentionally absent -- they cancel exactly in (y - mean).
    h1 = bn_relu(conv3x3(x_ref[...], w1_ref), g1_ref[...], bt1_ref[...])
    h2 = bn_relu(conv3x3(h1, w2_ref), g2_ref[...], bt2_ref[...])
    out_ref[...] = h2.astype(out_ref.dtype)


def _banded_conv_weights(wt, width):
    """(Cout, Cin, 3, 3) OIHW conv weight -> (3*width*Cin, width*Cout) K-stacked banded matrix.

    Block kh (rows kh*width*Cin : (kh+1)*width*Cin) holds
      B[(w_in*Cin + ci), (w_out*Cout + co)] = wt[co, ci, kh, w_in - w_out + 1]
    when |w_in - w_out| <= 1, else 0 -- the three column taps and the zero padding along W
    are folded into the single matmul contraction, and the three kh blocks are stacked
    along K so each conv layer is one MXU matmul.
    """
    wt = wt.astype(jnp.float32)
    cout, cin = wt.shape[0], wt.shape[1]
    blocks = []
    for kh in range(3):
        b = jnp.zeros((width * cin, width * cout), jnp.float32)
        for kw in range(3):
            diag = jnp.eye(width, k=1 - kw, dtype=jnp.float32)   # 1 iff w_in == w_out + kw - 1
            b = b + jnp.kron(diag, wt[:, :, kh, kw].T)            # (Cin, Cout) block
        blocks.append(b)
    return jnp.concatenate(blocks, axis=0)


def subnet2conv_nhwc(x_nhwc, params):
    """Lane-dense NHWC entry point (reshape only, no transposes)."""
    n, hh, ww, cin = x_nhwc.shape
    cout = params["w1"].shape[0]
    m = n * hh

    # --- plain-JAX glue: layout plumbing only ---
    x2d = x_nhwc.reshape(m, ww * cin).astype(jnp.float32)
    w1 = _banded_conv_weights(params["w1"], ww).astype(MXU_DTYPE)   # (3*W*Cin,  W*Cout)
    w2 = _banded_conv_weights(params["w2"], ww).astype(MXU_DTYPE)   # (3*W*Cout, W*Cout)
    tile = lambda v: jnp.tile(v.astype(jnp.float32).reshape(1, cout), (1, ww))  # (1, W*Cout)
    # Channel-group sum/broadcast matrix for BN stats over the fused W*C lanes,
    # with the 1/(N*H*W) normalisation folded in.
    s_mat = (jnp.kron(jnp.ones((ww, ww), jnp.float32), jnp.eye(cout, dtype=jnp.float32))
             * (1.0 / float(m * ww)))
    # Per-row "neighbour row exists inside this image" masks (H zero padding).
    rows_in_img = jnp.arange(m) % hh
    has_up = (rows_in_img != 0).astype(jnp.float32).reshape(m, 1)
    has_dn = (rows_in_img != hh - 1).astype(jnp.float32).reshape(m, 1)

    args = (x2d, has_up, has_dn, w1, w2,
            tile(params["g1"]), tile(params["beta1"]),
            tile(params["g2"]), tile(params["beta2"]), s_mat)

    # VMEM budget from the actual resident set (gridless call => no double buffering):
    # inputs + output + the live activation-sized f32 temporaries + bounded headroom.
    nbytes = lambda a: int(a.size) * a.dtype.itemsize
    act_bytes = m * ww * cout * 4                        # one (N*H, W*Cout) f32 activation
    fused_bytes = m * 3 * ww * max(cin, cout) * 4        # largest K-fused conv operand
    vmem_limit = int(min(sum(nbytes(a) for a in args) + act_bytes
                         + 4 * act_bytes + 3 * fused_bytes + (8 << 20), 96 << 20))

    vmem_spec = pl.BlockSpec(memory_space=pltpu.MemorySpace.VMEM)
    out2d = pl.pallas_call(
        _subnet2conv_kernel,
        out_shape=jax.ShapeDtypeStruct((m, ww * cout), jnp.float32),
        in_specs=[vmem_spec] * len(args),
        out_specs=vmem_spec,
        compiler_params=pltpu.CompilerParams(vmem_limit_bytes=vmem_limit),
    )(*args)
    return out2d.reshape(n, hh, ww, cout)


def subnet2conv(x_nchw, params):
    """Thin NCHW adapter matching the PyTorch module interface."""
    # TODO(synk): keep activations NHWC end-to-end in the surrounding model and drop these
    # two transposes -- at toy shapes they are the largest remaining wall-clock term.
    x_nhwc = jnp.transpose(x_nchw, (0, 2, 3, 1))
    return jnp.transpose(subnet2conv_nhwc(x_nhwc, params), (0, 3, 1, 2))


def _reference_forward(x, params):
    """Plain-JAX f32 reference of the PyTorch module (training-mode BN, with conv bias)."""
    def conv(inp, w, b):
        y = lax.conv_general_dilated(inp, w, window_strides=(1, 1),
                                     padding=((1, 1), (1, 1)),
                                     dimension_numbers=("NCHW", "OIHW", "NCHW"))
        return y + b.reshape(1, -1, 1, 1)

    def bn_relu(y, g, bt):
        mean = jnp.mean(y, axis=(0, 2, 3), keepdims=True)
        var = jnp.mean((y - mean) ** 2, axis=(0, 2, 3), keepdims=True)
        yhat = (y - mean) * lax.rsqrt(var + EPS)
        return jnp.maximum(yhat * g.reshape(1, -1, 1, 1) + bt.reshape(1, -1, 1, 1), 0.0)

    h1 = bn_relu(conv(x, params["w1"], params["b1"]), params["g1"], params["beta1"])
    return bn_relu(conv(h1, params["w2"], params["b2"]), params["g2"], params["beta2"])


def init_params(key, n_in, n_out):
    # Deterministic synthetic init (PyTorch-like uniform fan-in bounds).
    k1, k2, k3, k4 = jax.random.split(key, 4)
    bound1 = 1.0 / jnp.sqrt(n_in * 9.0)
    bound2 = 1.0 / jnp.sqrt(n_out * 9.0)
    return {
        "w1": jax.random.uniform(k1, (n_out, n_in, 3, 3), jnp.float32, -bound1, bound1),
        "b1": jax.random.uniform(k2, (n_out,), jnp.float32, -bound1, bound1),
        "g1": jnp.ones((n_out,), jnp.float32),
        "beta1": jnp.zeros((n_out,), jnp.float32),
        "w2": jax.random.uniform(k3, (n_out, n_out, 3, 3), jnp.float32, -bound2, bound2),
        "b2": jax.random.uniform(k4, (n_out,), jnp.float32, -bound2, bound2),
        "g2": jnp.ones((n_out,), jnp.float32),
        "beta2": jnp.zeros((n_out,), jnp.float32),
    }


if __name__ == "__main__":
    key = jax.random.PRNGKey(0)
    kx, kp = jax.random.split(key)

    N, C_IN, C_OUT, H, W = 2, 4, 8, 16, 16
    x = jax.random.normal(kx, (N, C_IN, H, W), jnp.float32)   # NCHW like PyTorch
    params = init_params(kp, C_IN, C_OUT)

    out = jax.block_until_ready(jax.jit(subnet2conv)(x, params))
    assert out.shape == (N, C_OUT, H, W)

    # Self-check vs a plain-JAX f32 reference (kernel matmuls run in bf16).
    ref = _reference_forward(x, params)
    err = float(jnp.max(jnp.abs(out - ref)))
    tol = 0.05 * (1.0 + float(jnp.max(jnp.abs(ref))))
    assert err < tol, f"max abs err {err} exceeds tolerance {tol}"

    print("KERNEL_OK")
</pallas_src>

<mosaic_0001>
module attributes {stable_mosaic.version = 11 : i64} {
  func.func @_subnet2conv_kernel(%arg0: memref<32x64xf32, #tpu.memory_space<vmem>>, %arg1: memref<32x1xf32, #tpu.memory_space<vmem>>, %arg2: memref<32x1xf32, #tpu.memory_space<vmem>>, %arg3: memref<192x128xbf16, #tpu.memory_space<vmem>>, %arg4: memref<384x128xbf16, #tpu.memory_space<vmem>>, %arg5: memref<1x128xf32, #tpu.memory_space<vmem>>, %arg6: memref<1x128xf32, #tpu.memory_space<vmem>>, %arg7: memref<1x128xf32, #tpu.memory_space<vmem>>, %arg8: memref<1x128xf32, #tpu.memory_space<vmem>>, %arg9: memref<128x128xf32, #tpu.memory_space<vmem>>, %arg10: memref<32x128xf32, #tpu.memory_space<vmem>>) attributes {dimension_semantics = [], scalar_prefetch = 0 : i64, scratch_operands = 0 : i64, tpu.core_type = #tpu.core_type<tc>} {
    %c0 = arith.constant 0 : index
    %c0_0 = arith.constant 0 : index
    %0 = vector.load %arg1[%c0, %c0_0] : memref<32x1xf32, #tpu.memory_space<vmem>>, vector<32x1xf32>
    %c0_1 = arith.constant 0 : index
    %c0_2 = arith.constant 0 : index
    %1 = vector.load %arg2[%c0_1, %c0_2] : memref<32x1xf32, #tpu.memory_space<vmem>>, vector<32x1xf32>
    %c0_3 = arith.constant 0 : index
    %c0_4 = arith.constant 0 : index
    %2 = vector.load %arg9[%c0_3, %c0_4] : memref<128x128xf32, #tpu.memory_space<vmem>>, vector<128x128xf32>
    %c0_5 = arith.constant 0 : index
    %c0_6 = arith.constant 0 : index
    %3 = vector.load %arg0[%c0_5, %c0_6] : memref<32x64xf32, #tpu.memory_space<vmem>>, vector<32x64xf32>
    %c1_i32 = arith.constant 1 : i32
    %4 = tpu.dynamic_rotate %3 by %c1_i32 dim 0 : vector<32x64xf32>, i32 -> vector<32x64xf32>
    %5 = vector.broadcast %0 : vector<32x1xf32> to vector<32x64xf32>
    %6 = arith.mulf %4, %5 : vector<32x64xf32>
    %c31_i32 = arith.constant 31 : i32
    %7 = tpu.dynamic_rotate %3 by %c31_i32 dim 0 : vector<32x64xf32>, i32 -> vector<32x64xf32>
    %8 = vector.broadcast %1 : vector<32x1xf32> to vector<32x64xf32>
    %9 = arith.mulf %7, %8 : vector<32x64xf32>
    %10 = tpu.concatenate %6, %3, %9 in 1 : vector<32x64xf32>, vector<32x64xf32>, vector<32x64xf32> -> vector<32x192xf32>
    %11 = arith.truncf %10 : vector<32x192xf32> to vector<32x192xbf16>
    %c0_7 = arith.constant 0 : index
    %c0_8 = arith.constant 0 : index
    %12 = vector.load %arg3[%c0_7, %c0_8] : memref<192x128xbf16, #tpu.memory_space<vmem>>, vector<192x128xbf16>
    %cst = arith.constant dense<0.000000e+00> : vector<32x128xf32>
    %13 = tpu.matmul %11, %12, %cst {dimension_numbers = #tpu.dot_dimension_numbers<[1], [0], [0], [1], [0, 0, 1, 1], [], []>} : vector<32x192xbf16>, vector<192x128xbf16>, vector<32x128xf32> -> vector<32x128xf32>
    %c0_9 = arith.constant 0 : index
    %c0_10 = arith.constant 0 : index
    %14 = vector.load %arg5[%c0_9, %c0_10] : memref<1x128xf32, #tpu.memory_space<vmem>>, vector<1x128xf32>
    %c0_11 = arith.constant 0 : index
    %c0_12 = arith.constant 0 : index
    %15 = vector.load %arg6[%c0_11, %c0_12] : memref<1x128xf32, #tpu.memory_space<vmem>>, vector<1x128xf32>
    %cst_13 = arith.constant dense<0.000000e+00> : vector<128xf32>
    %16 = vector.multi_reduction <add>, %13, %cst_13 [0] : vector<32x128xf32> to vector<128xf32>
    %17 = vector.shape_cast %16 : vector<128xf32> to vector<1x128xf32>
    %cst_14 = arith.constant dense<0.000000e+00> : vector<1x128xf32>
    %18 = tpu.matmul %17, %2, %cst_14 {dimension_numbers = #tpu.dot_dimension_numbers<[1], [0], [0], [1], [0, 0, 1, 1], [], []>} : vector<1x128xf32>, vector<128x128xf32>, vector<1x128xf32> -> vector<1x128xf32>
    %19 = vector.broadcast %18 : vector<1x128xf32> to vector<32x128xf32>
    %20 = arith.subf %13, %19 : vector<32x128xf32>
    %21 = arith.mulf %20, %20 : vector<32x128xf32>
    %cst_15 = arith.constant dense<0.000000e+00> : vector<128xf32>
    %22 = vector.multi_reduction <add>, %21, %cst_15 [0] : vector<32x128xf32> to vector<128xf32>
    %23 = vector.shape_cast %22 : vector<128xf32> to vector<1x128xf32>
    %cst_16 = arith.constant dense<0.000000e+00> : vector<1x128xf32>
    %24 = tpu.matmul %23, %2, %cst_16 {dimension_numbers = #tpu.dot_dimension_numbers<[1], [0], [0], [1], [0, 0, 1, 1], [], []>} : vector<1x128xf32>, vector<128x128xf32>, vector<1x128xf32> -> vector<1x128xf32>
    %cst_17 = arith.constant 9.99999974E-6 : f32
    %25 = vector.broadcast %cst_17 : f32 to vector<1x128xf32>
    %26 = arith.addf %24, %25 : vector<1x128xf32>
    %27 = math.rsqrt %26 : vector<1x128xf32>
    %28 = arith.mulf %27, %14 : vector<1x128xf32>
    %29 = vector.broadcast %28 : vector<1x128xf32> to vector<32x128xf32>
    %30 = arith.mulf %20, %29 : vector<32x128xf32>
    %31 = vector.broadcast %15 : vector<1x128xf32> to vector<32x128xf32>
    %32 = arith.addf %30, %31 : vector<32x128xf32>
    %cst_18 = arith.constant 0.000000e+00 : f32
    %33 = vector.broadcast %cst_18 : f32 to vector<32x128xf32>
    %34 = arith.maximumf %32, %33 : vector<32x128xf32>
    %c1_i32_19 = arith.constant 1 : i32
    %35 = tpu.dynamic_rotate %34 by %c1_i32_19 dim 0 : vector<32x128xf32>, i32 -> vector<32x128xf32>
    %36 = vector.broadcast %0 : vector<32x1xf32> to vector<32x128xf32>
    %37 = arith.mulf %35, %36 : vector<32x128xf32>
    %c31_i32_20 = arith.constant 31 : i32
    %38 = tpu.dynamic_rotate %34 by %c31_i32_20 dim 0 : vector<32x128xf32>, i32 -> vector<32x128xf32>
    %39 = vector.broadcast %1 : vector<32x1xf32> to vector<32x128xf32>
    %40 = arith.mulf %38, %39 : vector<32x128xf32>
    %41 = tpu.concatenate %37, %34, %40 in 1 : vector<32x128xf32>, vector<32x128xf32>, vector<32x128xf32> -> vector<32x384xf32>
    %42 = arith.truncf %41 : vector<32x384xf32> to vector<32x384xbf16>
    %c0_21 = arith.constant 0 : index
    %c0_22 = arith.constant 0 : index
    %43 = vector.load %arg4[%c0_21, %c0_22] : memref<384x128xbf16, #tpu.memory_space<vmem>>, vector<384x128xbf16>
    %cst_23 = arith.constant dense<0.000000e+00> : vector<32x128xf32>
    %44 = tpu.matmul %42, %43, %cst_23 {dimension_numbers = #tpu.dot_dimension_numbers<[1], [0], [0], [1], [0, 0, 1, 1], [], []>} : vector<32x384xbf16>, vector<384x128xbf16>, vector<32x128xf32> -> vector<32x128xf32>
    %c0_24 = arith.constant 0 : index
    %c0_25 = arith.constant 0 : index
    %45 = vector.load %arg7[%c0_24, %c0_25] : memref<1x128xf32, #tpu.memory_space<vmem>>, vector<1x128xf32>
    %c0_26 = arith.constant 0 : index
    %c0_27 = arith.constant 0 : index
    %46 = vector.load %arg8[%c0_26, %c0_27] : memref<1x128xf32, #tpu.memory_space<vmem>>, vector<1x128xf32>
    %cst_28 = arith.constant dense<0.000000e+00> : vector<128xf32>
    %47 = vector.multi_reduction <add>, %44, %cst_28 [0] : vector<32x128xf32> to vector<128xf32>
    %48 = vector.shape_cast %47 : vector<128xf32> to vector<1x128xf32>
    %cst_29 = arith.constant dense<0.000000e+00> : vector<1x128xf32>
    %49 = tpu.matmul %48, %2, %cst_29 {dimension_numbers = #tpu.dot_dimension_numbers<[1], [0], [0], [1], [0, 0, 1, 1], [], []>} : vector<1x128xf32>, vector<128x128xf32>, vector<1x128xf32> -> vector<1x128xf32>
    %50 = vector.broadcast %49 : vector<1x128xf32> to vector<32x128xf32>
    %51 = arith.subf %44, %50 : vector<32x128xf32>
    %52 = arith.mulf %51, %51 : vector<32x128xf32>
    %cst_30 = arith.constant dense<0.000000e+00> : vector<128xf32>
    %53 = vector.multi_reduction <add>, %52, %cst_30 [0] : vector<32x128xf32> to vector<128xf32>
    %54 = vector.shape_cast %53 : vector<128xf32> to vector<1x128xf32>
    %cst_31 = arith.constant dense<0.000000e+00> : vector<1x128xf32>
    %55 = tpu.matmul %54, %2, %cst_31 {dimension_numbers = #tpu.dot_dimension_numbers<[1], [0], [0], [1], [0, 0, 1, 1], [], []>} : vector<1x128xf32>, vector<128x128xf32>, vector<1x128xf32> -> vector<1x128xf32>
    %cst_32 = arith.constant 9.99999974E-6 : f32
    %56 = vector.broadcast %cst_32 : f32 to vector<1x128xf32>
    %57 = arith.addf %55, %56 : vector<1x128xf32>
    %58 = math.rsqrt %57 : vector<1x128xf32>
    %59 = arith.mulf %58, %45 : vector<1x128xf32>
    %60 = vector.broadcast %59 : vector<1x128xf32> to vector<32x128xf32>
    %61 = arith.mulf %51, %60 : vector<32x128xf32>
    %62 = vector.broadcast %46 : vector<1x128xf32> to vector<32x128xf32>
    %63 = arith.addf %61, %62 : vector<32x128xf32>
    %cst_33 = arith.constant 0.000000e+00 : f32
    %64 = vector.broadcast %cst_33 : f32 to vector<32x128xf32>
    %65 = arith.maximumf %63, %64 : vector<32x128xf32>
    %c0_34 = arith.constant 0 : index
    %c0_35 = arith.constant 0 : index
    %66 = vector.load %arg10[%c0_34, %c0_35] : memref<32x128xf32, #tpu.memory_space<vmem>>, vector<32x128xf32>
    tpu.vector_store %arg10[%c0_34, %c0_35], %65 {strides = array<i32>} : memref<32x128xf32, #tpu.memory_space<vmem>>, vector<32x128xf32>,
    return
  }
}

</mosaic_0001>

<bundles_post_ra>
// kernel: subnet2conv.1
= control target key start
LH: loop header
LB: loop body
LE: loop exit
PB: predicated region body
PF: predicated region fallthrough
CT: control target
= control target key end

     0   :  { %v68_v0 = vlaneseq  ;;  %v1487_v1 = vmov 0   ;;  %s1488_s22 = smov 64   ;;  %v1489_v41 = vmov 0.0|0.0   ;;  %vm148_vm2 = vcmask 523264   ;;  %s1981_s2 = inlined_call_operand.vmem [shape: f32[32,1], index: 2, kind: input, shape index: {}]   ;;  %s1982_s1 = inlined_call_operand.vmem [shape: f32[32,1], index: 1, kind: input, shape index: {}]   ;;  %s1983_s0 = inlined_call_operand.vmem [shape: f32[32,64], index: 0, kind: input, shape index: {}]   ;;  %s1984_s3 = inlined_call_operand.vmem [shape: bf16[192,128], index: 3, kind: input, shape index: {}]   ;;  %s1985_s9 = inlined_call_operand.vmem [shape: f32[128,128], index: 9, kind: input, shape index: {}]   ;;  %s1986_s4 = inlined_call_operand.vmem [shape: bf16[384,128], index: 4, kind: input, shape index: {}]   ;;  %s1987_s5 = inlined_call_operand.vmem [shape: f32[1,128], index: 5, kind: input, shape index: {}]   ;;  %s1988_s6 = inlined_call_operand.vmem [shape: f32[1,128], index: 6, kind: input, shape index: {}]   ;;  %s1989_s7 = inlined_call_operand.vmem [shape: f32[1,128], index: 7, kind: input, shape index: {}]   ;;  %s1990_s8 = inlined_call_operand.vmem [shape: f32[1,128], index: 8, kind: input, shape index: {}]   ;;  %s1991_s10 = inlined_call_operand.vmem [shape: f32[32,128], index: 10, kind: output, shape index: {}]  }
   0x1   :  { %1436 = vset.pattern.permute.xlu1 %v1487_v1  ;;  %1435 = vset.pattern.permute.xlu0 %v1487_v1  ;;  %v40_v2 = vld [vmem:[%s1981_s2] sm:$0xff]  ;;  %v41_v5 = vld [vmem:[%s1981_s2 + $0x8] sm:$0xff]  ;;  %v39_v9 = vld [vmem:[%s1982_s1 + $0x18] sm:$0xff]  ;;  %vm1490_vm3 = vmmov 0  }
   0x2   :  { %v36_v3 = vld [vmem:[%s1982_s1] sm:$0xff]  ;;  %110 = vperm.xlu1 %1436, %v40_v2   ;;  %v1555_v4 = vshrl.u32 %v68_v0, 7  ;;  %v37_v6 = vld [vmem:[%s1982_s1 + $0x8] sm:$0xff]  ;;  %259 = vmatprep.subr.bf16.mxu0 %v1487_v1  ;;  %v38_v10 = vld [vmem:[%s1982_s1 + $0x10] sm:$0xff] }
   0x3   :  { %77 = vperm.xlu0 %1435, %v36_v3   ;;  %v60_v7 = vld [vmem:[%s1983_s0] sm:$0xff]  ;;  %v61_v8 = vld [vmem:[%s1983_s0 + $0x8] sm:$0xff]  ;;  %v63_v11 = vld [vmem:[%s1983_s0 + $0x18] sm:$0xff]  ;;  %1334 = vmatprep.subr.bf16.mxu1 %v1489_v41 }
   0x4   :  { %vm103_vm0 = vcmp.lt.s32.totalorder %v1555_v4, 7  ;;  %v1447_v12 = vld [vmem:[%s1984_s3] sm:$0xff]   ;;  %v99_v13 = vrot.slane %v60_v7, 1  ;;  %v100_v14 = vrot.slane %v61_v8, 1  ;;  %vm70_vm1 = vcmp.lt.s32.totalorder %v1555_v4, 1  ;;  %v1448_v15 = vld [vmem:[%s1984_s3 + $0x8] sm:$0xff]  }
   0x5   :  { %260 = vmatpush1.bf16.msra.mxu0 %v1447_v12  ;;  %v64_v16 = vrot.slane %v60_v7, 7  ;;  %v62_v17 = vld [vmem:[%s1983_s0 + $0x10] sm:$0xff]  ;;  %v67_v19 = vrot.slane %v63_v11, 7  ;;  %v43_v20 = vld [vmem:[%s1981_s2 + $0x18] sm:$0xff]  ;;  %v65_v24 = vrot.slane %v61_v8, 7  ;;  %v102_v29 = vrot.slane %v63_v11, 1 }
   0x6   :  { %115 = vperm.xlu1 %1436, %v41_v5   ;;  %261 = vmatprep.subr.bf16.mxu0 %v1487_v1  ;;  %v1593_v18 = vsel %vm103_vm0, %v99_v13, %v100_v14  ;;  %v101_v21 = vrot.slane %v62_v17, 1  ;;  %v42_v22 = vld [vmem:[%s1981_s2 + $0x10] sm:$0xff]  ;;  %v66_v27 = vrot.slane %v62_v17, 7  ;;  %v1442_v30 = vpack.i.bf16 %v63_v11, %v62_v17  ;;  %v1450_v36 = vld [vmem:[%s1984_s3 + $0x18] sm:$0xff]   ;;  %v1451_v37 = vld [vmem:[%s1984_s3 + $0x20] sm:$0xff]  }
   0x7   :  { %82 = vperm.xlu0 %1435, %v37_v6   ;;  %v1603_v23 = vsel %vm70_vm1, %v67_v19, %v64_v16  ;;  %v1449_v25 = vld [vmem:[%s1984_s3 + $0x10] sm:$0xff]   ;;  %v1613_v28 = vsel %vm70_vm1, %v64_v16, %v65_v24  ;;  %v1437_v33 = vpack.i.bf16 %v61_v8, %v60_v7  ;;  %v107_v34 = vsel %vm103_vm0, %v102_v29, %v99_v13  ;;  %v1452_v38 = vld [vmem:[%s1984_s3 + $0x28] sm:$0xff]   ;;  %v1454_v40 = vld [vmem:[%s1984_s3 + $0x38] sm:$0xff]  }
   0x8   :  { %v105_v26 = vsel %vm103_vm0, %v100_v14, %v101_v21  ;;  %v1617_v31 = vsel %vm70_vm1, %v66_v27, %v67_v19  ;;  %v1621_v32 = vsel %vm70_vm1, %v65_v24, %v66_v27  ;;  %v104_v35 = vsel %vm103_vm0, %v101_v21, %v102_v29  ;;  %v1453_v39 = vld [vmem:[%s1984_s3 + $0x30] sm:$0xff]   ;;  %v44_v42 = vld [vmem:[%s1985_s9] sm:$0xff]  ;;  %v45_v43 = vld [vmem:[%s1985_s9 + $0x8] sm:$0xff] }
   0x9   :  { %262 = vmatpush1.bf16.msra.mxu0 %v1448_v15  ;;  %v46_v44 = vld [vmem:[%s1985_s9 + $0x10] sm:$0xff]  ;;  %v1657_v45 = vpack.c.bf16 %v45_v43, %v44_v42  ;;  %v47_v46 = vld [vmem:[%s1985_s9 + $0x18] sm:$0xff]  ;;  %v1455_v47 = vld [vmem:[%s1984_s3 + $0x40] sm:$0xff]  }
   0xa   :  { %92 = vperm.xlu1 %1436, %v39_v9   ;;  %263 = vmatprep.subr.bf16.mxu0 %v1487_v1  ;;  %v1666_v48 = vpack.c.bf16 %v47_v46, %v46_v44  ;;  %v1456_v49 = vld [vmem:[%s1984_s3 + $0x48] sm:$0xff]   ;;  %v1457_v50 = vld [vmem:[%s1984_s3 + $0x50] sm:$0xff]   ;;  %v1458_v51 = vld [vmem:[%s1984_s3 + $0x58] sm:$0xff]  }
   0xb   :  { %87 = vperm.xlu0 %1435, %v38_v10   ;;  %1336 = vmatpush3.bf16.msra.mxu1 %v1657_v45  ;;  %v48_v19 = vld [vmem:[%s1985_s9 + $0x20] sm:$0xff]  ;;  %v55_v29 = vld [vmem:[%s1985_s9 + $0x58] sm:$0xff] }
   0xc   :  { %1337 = vmatprep.subr.bf16.mxu1 %v1489_v41 }
   0xd   :  { %264 = vmatpush1.bf16.msra.mxu0 %v1449_v25  ;;  %v52_v25 = vld [vmem:[%s1985_s9 + $0x40] sm:$0xff] }
   0xe   :  { %125 = vperm.xlu1 %1436, %v43_v20   ;;  %265 = vmatprep.subr.bf16.mxu0 %v1487_v1  ;;  %v49_v20 = vld [vmem:[%s1985_s9 + $0x28] sm:$0xff] }
   0xf   :  { %120 = vperm.xlu0 %1435, %v42_v22   ;;  %1339 = vmatpush3.bf16.msra.mxu1 %v1666_v48  ;;  %v1725_v21 = vpack.c.bf16 %v49_v20, %v48_v19  ;;  %v50_v22 = vld [vmem:[%s1985_s9 + $0x30] sm:$0xff] }
  0x10   :  { %1340 = vmatprep.subr.bf16.mxu1 %v1489_v41 }
  0x11   :  { %266 = vmatpush1.bf16.msra.mxu0 %v1450_v36 }
  0x12   :  { %1443 = vrot.lane.b32.xlu1 %v1442_v30, %s1488_s22  ;;  %267 = vmatprep.subr.bf16.mxu0 %v1487_v1 }
  0x13   :  { %1438 = vrot.lane.b32.xlu0 %v1437_v33, %s1488_s22  ;;  %1342 = vmatpush3.bf16.msra.mxu1 %v1725_v21 }
  0x14   :  { %1343 = vmatprep.subr.bf16.mxu1 %v1489_v41 }
  0x15   :  { %268 = vmatpush1.bf16.msra.mxu0 %v1451_v37  ;;  %v1491_v37 = vmov 0.0  }
  0x16   :  { %269 = vmatprep.subr.bf16.mxu0 %v1487_v1  ;;  %1206 = vmatprep.mubr.msk.f32.mxu1 %vm1490_vm3, %v1491_v37 }
  0x19   :  { %270 = vmatpush1.bf16.msra.mxu0 %v1452_v38 }
  0x1a   :  { %271 = vmatprep.subr.bf16.mxu0 %v1487_v1 }
  0x1d   :  { %272 = vmatpush1.bf16.msra.mxu0 %v1453_v39 }
  0x1e   :  { %273 = vmatprep.subr.bf16.mxu0 %v1487_v1 }
  0x21   :  { %274 = vmatpush1.bf16.msra.mxu0 %v1454_v40 }
  0x22   :  { %275 = vmatprep.subr.bf16.mxu0 %v1487_v1 }
  0x25   :  { %276 = vmatpush1.bf16.msra.mxu0 %v1455_v47 }
  0x26   :  { %277 = vmatprep.subr.bf16.mxu0 %v1487_v1 }
  0x29   :  { %278 = vmatpush1.bf16.msra.mxu0 %v1456_v49 }
  0x2a   :  { %279 = vmatprep.subr.bf16.mxu0 %v1487_v1 }
  0x2d   :  { %280 = vmatpush1.bf16.msra.mxu0 %v1457_v50 }
  0x2e   :  { %281 = vmatprep.subr.bf16.mxu0 %v1487_v1 }
  0x31   :  { %282 = vmatpush1.bf16.msra.mxu0 %v1458_v51 }
  0x81   :  { %v1684_v52 = vpop.permute.xlu1 %110 }
  0x82   :  { %v1686_v53 = vpop.permute.xlu0 %77  ;;  %v128_v54 = vmul.f32 %v1684_v52, %v1593_v18 }
  0x83   :  { %v95_v2 = vmul.f32 %v1686_v53, %v1603_v23  ;;  %v51_v23 = vld [vmem:[%s1985_s9 + $0x38] sm:$0xff] }
  0x84   :  { %v1735_v24 = vpack.c.bf16 %v51_v23, %v50_v22 }
  0x85   :  { %v1690_v55 = vpop.permute.xlu1 %115 }
  0x86   :  { %v1692_v56 = vpop.permute.xlu0 %82  ;;  %v129_v57 = vmul.f32 %v1690_v55, %v105_v26  ;;  %1345 = vmatpush3.bf16.msra.mxu1 %v1735_v24  ;;  %v53_v26 = vld [vmem:[%s1985_s9 + $0x48] sm:$0xff] }
  0x87   :  { %v96_v3 = vmul.f32 %v1692_v56, %v1613_v28  ;;  %1346 = vmatprep.subr.bf16.mxu1 %v1489_v41  ;;  %v1745_v27 = vpack.c.bf16 %v53_v26, %v52_v25  ;;  %v54_v28 = vld [vmem:[%s1985_s9 + $0x50] sm:$0xff] }
  0x88   :  { %v154_v58 = vpack.c.bf16 %v129_v57, %v128_v54  ;;  %v1755_v30 = vpack.c.bf16 %v55_v29, %v54_v28  ;;  %v1460_v28 = vld [vmem:[%s1986_s4] sm:$0xff]  }
  0x89   :  { %v1695_v59 = vpop.permute.xlu1 %92  ;;  %v1461_v29 = vld [vmem:[%s1986_s4 + $0x80] sm:$0xff]  }
  0x8a   :  { %v1697_v60 = vpop.permute.xlu0 %87  ;;  %1040 = vmatprep.mubr.msk.bf16.mxu0 %vm148_vm2, %v154_v58  ;;  %v98_v5 = vmul.f32 %v1695_v59, %v1617_v31  ;;  %1348 = vmatpush3.bf16.msra.mxu1 %v1745_v27  ;;  %v56_v31 = vld [vmem:[%s1985_s9 + $0x60] sm:$0xff] }
  0x8b   :  { %v97_v6 = vmul.f32 %v1697_v60, %v1621_v32  ;;  %1349 = vmatprep.subr.bf16.mxu1 %v1489_v41  ;;  %v57_v32 = vld [vmem:[%s1985_s9 + $0x68] sm:$0xff] }
  0x8c   :  { %v1765_v33 = vpack.c.bf16 %v57_v32, %v56_v31  ;;  %v1462_v31 = vld [vmem:[%s1986_s4 + $0x48] sm:$0xff]  }
  0x8d   :  { %v1700_v61 = vpop.permute.xlu1 %125  ;;  %v1463_v32 = vld [vmem:[%s1986_s4 + $0x8] sm:$0xff]  }
  0x8e   :  { %v1702_v62 = vpop.permute.xlu0 %120  ;;  %v131_v63 = vmul.f32 %v1700_v61, %v107_v34  ;;  %1351 = vmatpush3.bf16.msra.mxu1 %v1755_v30  ;;  %v58_v34 = vld [vmem:[%s1985_s9 + $0x70] sm:$0xff] }
  0x8f   :  { %v130_v0 = vmul.f32 %v1702_v62, %v104_v35  ;;  %1352 = vmatprep.subr.bf16.mxu1 %v1489_v41  ;;  %v59_v35 = vld [vmem:[%s1985_s9 + $0x78] sm:$0xff] }
  0x90   :  { %v1775_v36 = vpack.c.bf16 %v59_v35, %v58_v34  ;;  %v1464_v34 = vld [vmem:[%s1986_s4 + $0x88] sm:$0xff]   ;;  %v1465_v35 = vld [vmem:[%s1986_s4 + $0x50] sm:$0xff]  }
  0x91   :  { %v156_v1 = vpack.c.bf16 %v131_v63, %v130_v0  ;;  %v1444_v7 = vpop.permute.xlu1 %1443 }
  0x92   :  { %v1439_v8 = vpop.permute.xlu0 %1438  ;;  %v1446_v9 = vunpack.i.h.bf16 %v1444_v7  ;;  %v1445_v10 = vunpack.i.l.bf16 %v1444_v7  ;;  %1354 = vmatpush3.bf16.msra.mxu1 %v1765_v33 }
  0x93   :  { %v1441_v11 = vunpack.i.h.bf16 %v1439_v8  ;;  %v1440_v12 = vunpack.i.l.bf16 %v1439_v8  ;;  %1355 = vmatprep.subr.bf16.mxu1 %v1489_v41 }
  0x94   :  { %v151_v15 = vsel %vm148_vm2, %v97_v6, %v1445_v10  ;;  %v152_v16 = vsel %vm148_vm2, %v98_v5, %v1446_v9 }
  0x95   :  { %v149_v13 = vsel %vm148_vm2, %v95_v2, %v1440_v12  ;;  %v150_v14 = vsel %vm148_vm2, %v96_v3, %v1441_v11  ;;  %v155_v18 = vpack.c.bf16 %v152_v16, %v151_v15  ;;  %v1459_v2 = vld [vmem:[%s1986_s4 + $0x40] sm:$0xff]   ;;  %v1802_v3 = vsub.s32 0, %v1555_v4 }
  0x96   :  { %v153_v17 = vpack.c.bf16 %v150_v14, %v149_v13  ;;  %1357 = vmatpush3.bf16.msra.mxu1 %v1775_v36  ;;  %1102 = vmatprep.subr.bf16.mxu0 %v1459_v2 }
  0x97   :  { %1358 = vmatprep.subr.bf16.mxu1 %v1489_v41 }
  0x98   :  { %292 = vmatmul.mubr.bf16.vlgmr.msra.gmra.mrb[0].mxu0 %v153_v17 }
  0x99   :  { %1041 = vmatprep.mubr.msk.bf16.mxu0 %vm148_vm2, %v156_v1  ;;  %1103 = vmatpush3.bf16.msra.mxu0 %v1460_v28 }
  0x9a   :  { %1104 = vmatprep.subr.bf16.mxu0 %v1462_v31 }
  0x9d   :  { %1105 = vmatpush3.bf16.msra.mxu0 %v1463_v32 }
  0x9e   :  { %1106 = vmatprep.subr.bf16.mxu0 %v1465_v35 }
  0xa0   :  { %300 = vmatmul.mubr.bf16.gmra.mrb[4].mxu0 %v155_v18 }
 0x16b   :  { %v293_v38 = vpop.f32.mrb[0].mxu0 }
 0x16c   :  { %v295_v39 = vpop.f32.mrb[1].mxu0 }
 0x16d   :  { %v296_v40 = vpop.f32.mrb[2].mxu0  ;;  %v1467_v39 = vld [vmem:[%s1986_s4 + $0x90] sm:$0xff]  }
 0x16e   :  { %v310_v42 = vadd.f32 %v296_v40, %v293_v38  ;;  %v298_v43 = vpop.f32.mrb[3].mxu0 }
 0x16f   :  { %v1470_v43 = vld [vmem:[%s1986_s4 + $0x98] sm:$0xff]  }
 0x173   :  { %v301_v44 = vpop.f32.mrb[4].mxu0 }
 0x174   :  { %v311_v46 = vadd.f32 %v310_v42, %v301_v44  ;;  %v303_v47 = vpop.f32.mrb[5].mxu0  ;;  %v1469_v42 = vld [vmem:[%s1986_s4 + $0x18] sm:$0xff]  }
 0x175   :  { %v304_v49 = vpop.f32.mrb[6].mxu0  ;;  %v1473_v47 = vld [vmem:[%s1986_s4 + $0xa0] sm:$0xff]  }
 0x176   :  { %v312_v50 = vadd.f32 %v311_v46, %v304_v49  ;;  %v306_v51 = vpop.f32.mrb[7].mxu0  ;;  %v1472_v46 = vld [vmem:[%s1986_s4 + $0x20] sm:$0xff]  }
 0x177   :  { %v1476_v51 = vld [vmem:[%s1986_s4 + $0xa8] sm:$0xff]  }
 0x178   :  { %v313_v54 = vrot.slane %v312_v50, 4 }
 0x17a   :  { %v314_v57 = vadd.f32 %v313_v54, %v312_v50  ;;  %v1475_v50 = vld [vmem:[%s1986_s4 + $0x28] sm:$0xff]   ;;  %v1477_v54 = vld [vmem:[%s1986_s4 + $0x70] sm:$0xff]  }
 0x17c   :  { %v315_v58 = vrot.slane %v314_v57, 2 }
 0x17e   :  { %v316_v63 = vadd.f32 %v315_v58, %v314_v57  ;;  %v1479_v57 = vld [vmem:[%s1986_s4 + $0xb0] sm:$0xff]  }
 0x17f   :  { %v1478_v58 = vld [vmem:[%s1986_s4 + $0x30] sm:$0xff]  }
 0x180   :  { %v317_v0 = vrot.slane %v316_v63, 1 }
 0x182   :  { %v318_v1 = vadd.f32 %v317_v0, %v316_v63  ;;  %v1480_v63 = vld [vmem:[%s1986_s4 + $0x78] sm:$0xff]  }
 0x183   :  { %v1481_v0 = vld [vmem:[%s1986_s4 + $0x38] sm:$0xff]  }
 0x184   :  { %1207 = vmatmul.mubr.f32.vlgmr.msra.gmra.mrb[0].mxu1 %v318_v1  ;;  %v1482_v1 = vld [vmem:[%s1986_s4 + $0xb8] sm:$0xff]  }
 0x185   :  { %1360 = vmatpush3.bf16.msra.mxu1 %v1657_v45  ;;  %1241 = vmatprep.mubr.msk.f32.mxu1 %vm1490_vm3, %v1491_v37 }
 0x186   :  { %1361 = vmatprep.subr.bf16.mxu1 %v1489_v41 }
 0x189   :  { %1363 = vmatpush3.bf16.msra.mxu1 %v1666_v48 }
 0x18a   :  { %1364 = vmatprep.subr.bf16.mxu1 %v1489_v41 }
 0x18d   :  { %1366 = vmatpush3.bf16.msra.mxu1 %v1725_v21 }
 0x18e   :  { %1367 = vmatprep.subr.bf16.mxu1 %v1489_v41 }
 0x191   :  { %1369 = vmatpush3.bf16.msra.mxu1 %v1735_v24 }
 0x192   :  { %1370 = vmatprep.subr.bf16.mxu1 %v1489_v41 }
 0x195   :  { %1372 = vmatpush3.bf16.msra.mxu1 %v1745_v27 }
 0x196   :  { %1373 = vmatprep.subr.bf16.mxu1 %v1489_v41 }
 0x199   :  { %1375 = vmatpush3.bf16.msra.mxu1 %v1755_v30 }
 0x19a   :  { %1376 = vmatprep.subr.bf16.mxu1 %v1489_v41 }
 0x19d   :  { %1378 = vmatpush3.bf16.msra.mxu1 %v1765_v33 }
 0x19e   :  { %1379 = vmatprep.subr.bf16.mxu1 %v1489_v41 }
 0x1a1   :  { %1381 = vmatpush3.bf16.msra.mxu1 %v1775_v36 }
 0x1a2   :  { %1244 = vmatprep.subr.bf16.mxu1 %v1461_v29 }
 0x257   :  { %v385_v5 = vpop.f32.mrb[0].mxu1 }
 0x258   :  { %v392_v6 = vrot.slane %v385_v5, %v1802_v3  ;;  %v1208_v7 = vpop.f32.mrb[1].mxu1 }
 0x259   :  { %v308_v7 = vld [vmem:[%s1987_s5] sm:$0x1] }
 0x25a   :  { %v1805_v8 = vsub.f32 %v293_v38, %v392_v6  ;;  %v1807_v9 = vsub.f32 %v296_v40, %v392_v6  ;;  %v1809_v10 = vsub.f32 %v301_v44, %v392_v6  ;;  %v1811_v11 = vsub.f32 %v304_v49, %v392_v6  ;;  %v1466_v38 = vld [vmem:[%s1986_s4 + $0x10] sm:$0xff]   ;;  %v1468_v40 = vld [vmem:[%s1986_s4 + $0x58] sm:$0xff]   ;;  %v1471_v44 = vld [vmem:[%s1986_s4 + $0x60] sm:$0xff]  }
 0x25b   :  { %1107 = vmatpush3.bf16.msra.mxu0 %v1466_v38  ;;  %v1474_v49 = vld [vmem:[%s1986_s4 + $0x68] sm:$0xff]  }
 0x25c   :  { %v397_v12 = vmul.f32 %v1805_v8, %v1805_v8  ;;  %v398_v13 = vmul.f32 %v1807_v9, %v1807_v9  ;;  %v399_v14 = vmul.f32 %v1809_v10, %v1809_v10  ;;  %v400_v16 = vmul.f32 %v1811_v11, %v1811_v11  ;;  %1108 = vmatprep.subr.bf16.mxu0 %v1468_v40 }
 0x25e   :  { %v401_v15 = vadd.f32 %v398_v13, %v397_v12 }
 0x25f   :  { %1109 = vmatpush3.bf16.msra.mxu0 %v1469_v42 }
 0x260   :  { %v402_v17 = vadd.f32 %v401_v15, %v399_v14  ;;  %1110 = vmatprep.subr.bf16.mxu0 %v1471_v44  ;;  %v1042_v15 = vld [vmem:[%s1988_s6] ss:$0 sm:$0xff] }
 0x262   :  { %v403_v18 = vadd.f32 %v402_v17, %v400_v16 }
 0x263   :  { %1111 = vmatpush3.bf16.msra.mxu0 %v1472_v46 }
 0x264   :  { %v404_v19 = vrot.slane %v403_v18, 4  ;;  %1112 = vmatprep.subr.bf16.mxu0 %v1474_v49 }
 0x266   :  { %v405_v20 = vadd.f32 %v404_v19, %v403_v18 }
 0x267   :  { %1113 = vmatpush3.bf16.msra.mxu0 %v1475_v50 }
 0x268   :  { %v406_v22 = vrot.slane %v405_v20, 2  ;;  %1114 = vmatprep.subr.bf16.mxu0 %v1477_v54 }
 0x26a   :  { %v407_v23 = vadd.f32 %v406_v22, %v405_v20 }
 0x26b   :  { %1115 = vmatpush3.bf16.msra.mxu0 %v1478_v58 }
 0x26c   :  { %v408_v25 = vrot.slane %v407_v23, 1  ;;  %1116 = vmatprep.subr.bf16.mxu0 %v1480_v63 }
 0x26e   :  { %v409_v26 = vadd.f32 %v408_v25, %v407_v23 }
 0x26f   :  { %1117 = vmatpush3.bf16.msra.mxu0 %v1481_v0 }
 0x270   :  { %1242 = vmatmul.mubr.f32.vlgmr.msra.gmra.mrb[2].mxu1 %v409_v26  ;;  %1382 = vmatprep.subr.bf16.mxu0 %v1489_v41 }
 0x271   :  { %1245 = vmatpush3.bf16.msra.mxu1 %v1461_v29 }
 0x272   :  { %1246 = vmatprep.subr.bf16.mxu1 %v1464_v34 }
 0x275   :  { %1247 = vmatpush3.bf16.msra.mxu1 %v1464_v34 }
 0x276   :  { %1248 = vmatprep.subr.bf16.mxu1 %v1467_v39 }
 0x279   :  { %1249 = vmatpush3.bf16.msra.mxu1 %v1467_v39 }
 0x27a   :  { %1250 = vmatprep.subr.bf16.mxu1 %v1470_v43 }
 0x27d   :  { %1251 = vmatpush3.bf16.msra.mxu1 %v1470_v43 }
 0x27e   :  { %1252 = vmatprep.subr.bf16.mxu1 %v1473_v47 }
 0x281   :  { %1253 = vmatpush3.bf16.msra.mxu1 %v1473_v47 }
 0x282   :  { %1254 = vmatprep.subr.bf16.mxu1 %v1476_v51 }
 0x285   :  { %1255 = vmatpush3.bf16.msra.mxu1 %v1476_v51 }
 0x286   :  { %1256 = vmatprep.subr.bf16.mxu1 %v1479_v57 }
 0x289   :  { %1257 = vmatpush3.bf16.msra.mxu1 %v1479_v57 }
 0x28a   :  { %1258 = vmatprep.subr.bf16.mxu1 %v1482_v1 }
 0x28d   :  { %1259 = vmatpush3.bf16.msra.mxu1 %v1482_v1 }
 0x28e   :  { %1406 = vmatprep.subr.bf16.mxu1 %v1489_v41 }
 0x343   :  { %v476_v2 = vpop.f32.mrb[2].mxu1 }
 0x344   :  { %v477_v5 = vadd.f32 1e-05, %v476_v2  ;;  %v1243_v6 = vpop.f32.mrb[3].mxu1 }
 0x346   :  { %1483 = vrsqrt.f32 %v477_v5 }
 0x350   :  { %v1484_v12 = vpop.eup %1483 }
 0x351   :  { %v481_v13 = vmul.f32 %v1484_v12, %v308_v7 }
 0x353   :  { %v485_v14 = vrot.slane %v481_v13, %v1802_v3 }
 0x355   :  { %v486_v16 = vmul.f32 %v485_v14, %v1805_v8  ;;  %v487_v17 = vmul.f32 %v485_v14, %v1807_v9  ;;  %v489_v18 = vmul.f32 %v485_v14, %v1811_v11  ;;  %v488_v19 = vmul.f32 %v485_v14, %v1809_v10 }
 0x357   :  { %v496_v20 = vadd.f32 %v1042_v15, %v486_v16  ;;  %v497_v22 = vadd.f32 %v1042_v15, %v487_v17  ;;  %v499_v23 = vadd.f32 %v1042_v15, %v489_v18  ;;  %v498_v25 = vadd.f32 %v1042_v15, %v488_v19 }
 0x359   :  { %v500_v26 = vmax.f32 %v496_v20, 0.0  ;;  %v501_v28 = vmax.f32 %v497_v22, 0.0  ;;  %v503_v29 = vmax.f32 %v499_v23, 0.0  ;;  %v502_v31 = vmax.f32 %v498_v25, 0.0 }
 0x35b   :  { %v504_v32 = vrot.slane %v500_v26, 7  ;;  %v505_v34 = vrot.slane %v501_v28, 7  ;;  %v529_v35 = vpack.c.bf16 %v501_v28, %v500_v26  ;;  %v507_v38 = vrot.slane %v503_v29, 7 }
 0x35c   :  { %v516_v39 = vrot.slane %v500_v26, 1  ;;  %v517_v8 = vrot.slane %v501_v28, 1  ;;  %v518_v40 = vrot.slane %v502_v31, 1  ;;  %v519_v11 = vrot.slane %v503_v29, 1 }
 0x35d   :  { %758 = vmatprep.mubr.bf16.mxu0 %v529_v35  ;;  %v510_v9 = vsel %vm70_vm1, %v504_v32, %v505_v34  ;;  %v511_v10 = vsel %vm70_vm1, %v507_v38, %v504_v32  ;;  %v506_v42 = vrot.slane %v502_v31, 7  ;;  %v532_v63 = vpack.c.bf16 %v503_v29, %v502_v31 }
 0x35e   :  { %v512_v43 = vmul.f32 %v511_v10, %v1686_v53  ;;  %v513_v44 = vmul.f32 %v510_v9, %v1692_v56  ;;  %v521_v46 = vsel %vm103_vm0, %v517_v8, %v518_v40  ;;  %v522_v47 = vsel %vm103_vm0, %v516_v39, %v517_v8 }
 0x35f   :  { %v524_v49 = vmul.f32 %v522_v47, %v1684_v52  ;;  %v525_v50 = vmul.f32 %v521_v46, %v1690_v55  ;;  %v520_v51 = vsel %vm103_vm0, %v518_v40, %v519_v11  ;;  %v523_v54 = vsel %vm103_vm0, %v519_v11, %v516_v39 }
 0x360   :  { %v528_v57 = vpack.c.bf16 %v513_v44, %v512_v43  ;;  %v526_v53 = vmul.f32 %v520_v51, %v1702_v62  ;;  %v527_v56 = vmul.f32 %v523_v54, %v1700_v61  ;;  %v508_v0 = vsel %vm70_vm1, %v506_v42, %v507_v38 }
 0x361   :  { %v530_v58 = vpack.c.bf16 %v525_v50, %v524_v49  ;;  %v509_v52 = vsel %vm70_vm1, %v505_v34, %v506_v42  ;;  %v515_v2 = vmul.f32 %v508_v0, %v1695_v59 }
 0x362   :  { %759 = vmatmul.mubr.bf16.vlgmr.msra.gmra.mrb[8].mxu0 %v528_v57  ;;  %v533_v55 = vpack.c.bf16 %v527_v56, %v526_v53  ;;  %v514_v1 = vmul.f32 %v509_v52, %v1697_v60  ;;  %v824_v57 = vld [vmem:[%s1989_s7] sm:$0x1] }
 0x363   :  { %1260 = vmatprep.mubr.bf16.mxu1 %v530_v58  ;;  %766 = vmatprep.mubr.bf16.mxu0 %v532_v63  ;;  %v1067_v63 = vld [vmem:[%s1990_s8] ss:$0 sm:$0xff] }
 0x364   :  { %1261 = vmatmul.mubr.bf16.vlgmr.msra.gmra.mrb[4].mxu1 %v533_v55  ;;  %1384 = vmatpush3.bf16.msra.mxu0 %v1657_v45  ;;  %v531_v4 = vpack.c.bf16 %v515_v2, %v514_v1 }
 0x365   :  { %1385 = vmatprep.subr.bf16.mxu0 %v1489_v41  ;;  %1408 = vmatpush3.bf16.msra.mxu1 %v1657_v45 }
 0x366   :  { %1409 = vmatprep.subr.bf16.mxu1 %v1489_v41  ;;  %1331 = vmatprep.mubr.msk.f32.mxu1 %vm1490_vm3, %v1491_v37 }
 0x368   :  { %1387 = vmatpush3.bf16.msra.mxu0 %v1666_v48 }
 0x369   :  { %1388 = vmatprep.subr.bf16.mxu0 %v1489_v41  ;;  %1411 = vmatpush3.bf16.msra.mxu1 %v1666_v48 }
 0x36a   :  { %767 = vmatmul.mubr.bf16.gmra.mrb[12].mxu0 %v531_v4  ;;  %1412 = vmatprep.subr.bf16.mxu1 %v1489_v41 }
 0x36b   :  { %1296 = vmatprep.mubr.msk.f32.mxu0 %vm1490_vm3, %v1491_v37 }
 0x36c   :  { %1390 = vmatpush3.bf16.msra.mxu0 %v1725_v21 }
 0x36d   :  { %1391 = vmatprep.subr.bf16.mxu0 %v1489_v41  ;;  %1414 = vmatpush3.bf16.msra.mxu1 %v1725_v21 }
 0x36e   :  { %1415 = vmatprep.subr.bf16.mxu1 %v1489_v41 }
 0x370   :  { %1393 = vmatpush3.bf16.msra.mxu0 %v1735_v24 }
 0x371   :  { %1394 = vmatprep.subr.bf16.mxu0 %v1489_v41  ;;  %1417 = vmatpush3.bf16.msra.mxu1 %v1735_v24 }
 0x372   :  { %1418 = vmatprep.subr.bf16.mxu1 %v1489_v41 }
 0x374   :  { %1396 = vmatpush3.bf16.msra.mxu0 %v1745_v27 }
 0x375   :  { %1397 = vmatprep.subr.bf16.mxu0 %v1489_v41  ;;  %1420 = vmatpush3.bf16.msra.mxu1 %v1745_v27 }
 0x376   :  { %1421 = vmatprep.subr.bf16.mxu1 %v1489_v41 }
 0x378   :  { %1399 = vmatpush3.bf16.msra.mxu0 %v1755_v30 }
 0x379   :  { %1400 = vmatprep.subr.bf16.mxu0 %v1489_v41  ;;  %1423 = vmatpush3.bf16.msra.mxu1 %v1755_v30 }
 0x37a   :  { %1424 = vmatprep.subr.bf16.mxu1 %v1489_v41 }
 0x37c   :  { %1402 = vmatpush3.bf16.msra.mxu0 %v1765_v33 }
 0x37d   :  { %1403 = vmatprep.subr.bf16.mxu0 %v1489_v41  ;;  %1426 = vmatpush3.bf16.msra.mxu1 %v1765_v33 }
 0x37e   :  { %1427 = vmatprep.subr.bf16.mxu1 %v1489_v41 }
 0x380   :  { %1405 = vmatpush3.bf16.msra.mxu0 %v1775_v36 }
 0x381   :  { %1429 = vmatpush3.bf16.msra.mxu1 %v1775_v36 }
 0x435   :  { %v1118_v45 = vpop.f32.mrb[8].mxu0 }
 0x436   :  { %v1119_v48 = vpop.f32.mrb[9].mxu0 }
 0x437   :  { %v1120_v59 = vadd.f32 %v1119_v48, %v1118_v45  ;;  %v1262_v60 = vpop.f32.mrb[4].mxu1  ;;  %v1121_v61 = vpop.f32.mrb[10].mxu0 }
 0x438   :  { %v809_v62 = vpop.f32.mrb[5].mxu1  ;;  %v1122_v21 = vpop.f32.mrb[11].mxu0 }
 0x439   :  { %v810_v24 = vadd.f32 %v1120_v59, %v809_v62  ;;  %v1123_v27 = vadd.f32 %v1122_v21, %v1121_v61  ;;  %v1263_v30 = vpop.f32.mrb[6].mxu1 }
 0x43a   :  { %v812_v37 = vpop.f32.mrb[7].mxu1 }
 0x43b   :  { %v813_v5 = vadd.f32 %v1123_v27, %v812_v37 }
 0x43d   :  { %v1124_v6 = vpop.f32.mrb[12].mxu0  ;;  %v826_v13 = vadd.f32 %v813_v5, %v810_v24 }
 0x43e   :  { %v1125_v33 = vpop.f32.mrb[13].mxu0 }
 0x43f   :  { %v1126_v7 = vadd.f32 %v1125_v33, %v1124_v6  ;;  %v1127_v41 = vpop.f32.mrb[14].mxu0 }
 0x440   :  { %v1128_v12 = vpop.f32.mrb[15].mxu0 }
 0x441   :  { %v818_v14 = vadd.f32 %v1262_v60, %v1126_v7  ;;  %v1129_v36 = vadd.f32 %v1128_v12, %v1127_v41 }
 0x443   :  { %v827_v15 = vadd.f32 %v826_v13, %v818_v14  ;;  %v821_v16 = vadd.f32 %v1263_v30, %v1129_v36 }
 0x445   :  { %v828_v17 = vadd.f32 %v827_v15, %v821_v16 }
 0x447   :  { %v829_v18 = vrot.slane %v828_v17, 4 }
 0x449   :  { %v830_v19 = vadd.f32 %v829_v18, %v828_v17 }
 0x44b   :  { %v831_v20 = vrot.slane %v830_v19, 2 }
 0x44d   :  { %v832_v22 = vadd.f32 %v831_v20, %v830_v19 }
 0x44f   :  { %v833_v23 = vrot.slane %v832_v22, 1 }
 0x451   :  { %v834_v25 = vadd.f32 %v833_v23, %v832_v22 }
 0x453   :  { %1297 = vmatmul.mubr.f32.vlgmr.msra.gmra.mrb[16].mxu0 %v834_v25 }
 0x526   :  { %v901_v26 = vpop.f32.mrb[16].mxu0 }
 0x527   :  { %v908_v28 = vrot.slane %v901_v26, %v1802_v3  ;;  %v1298_v29 = vpop.f32.mrb[17].mxu0 }
 0x529   :  { %v909_v31 = vsub.f32 %v810_v24, %v908_v28  ;;  %v910_v32 = vsub.f32 %v813_v5, %v908_v28  ;;  %v911_v34 = vsub.f32 %v818_v14, %v908_v28  ;;  %v912_v35 = vsub.f32 %v821_v16, %v908_v28 }
 0x52b   :  { %v913_v38 = vmul.f32 %v909_v31, %v909_v31  ;;  %v914_v39 = vmul.f32 %v910_v32, %v910_v32  ;;  %v915_v8 = vmul.f32 %v911_v34, %v911_v34  ;;  %v916_v9 = vmul.f32 %v912_v35, %v912_v35 }
 0x52d   :  { %v917_v40 = vadd.f32 %v914_v39, %v913_v38 }
 0x52f   :  { %v918_v10 = vadd.f32 %v917_v40, %v915_v8 }
 0x531   :  { %v919_v11 = vadd.f32 %v918_v10, %v916_v9 }
 0x533   :  { %v920_v42 = vrot.slane %v919_v11, 4 }
 0x535   :  { %v921_v43 = vadd.f32 %v920_v42, %v919_v11 }
 0x537   :  { %v922_v44 = vrot.slane %v921_v43, 2 }
 0x539   :  { %v923_v46 = vadd.f32 %v922_v44, %v921_v43 }
 0x53b   :  { %v924_v47 = vrot.slane %v923_v46, 1 }
 0x53d   :  { %v925_v49 = vadd.f32 %v924_v47, %v923_v46 }
 0x53f   :  { %1332 = vmatmul.mubr.f32.vlgmr.msra.gmra.mrb[8].mxu1 %v925_v49 }
 0x612   :  { %v992_v50 = vpop.f32.mrb[8].mxu1 }
 0x613   :  { %v993_v51 = vadd.f32 1e-05, %v992_v50  ;;  %v1333_v54 = vpop.f32.mrb[9].mxu1 }
 0x615   :  { %1485 = vrsqrt.f32 %v993_v51 }
 0x61f   :  { %v1486_v53 = vpop.eup %1485 }
 0x620   :  { %v997_v56 = vmul.f32 %v1486_v53, %v824_v57 }
 0x622   :  { %v1001_v58 = vrot.slane %v997_v56, %v1802_v3 }
 0x624   :  { %v1002_v0 = vmul.f32 %v1001_v58, %v909_v31  ;;  %v1003_v52 = vmul.f32 %v1001_v58, %v910_v32  ;;  %v1004_v55 = vmul.f32 %v1001_v58, %v911_v34  ;;  %v1005_v1 = vmul.f32 %v1001_v58, %v912_v35 }
 0x626   :  { %v1012_v2 = vadd.f32 %v1067_v63, %v1002_v0  ;;  %v1013_v4 = vadd.f32 %v1067_v63, %v1003_v52  ;;  %v1014_v45 = vadd.f32 %v1067_v63, %v1004_v55  ;;  %v1015_v48 = vadd.f32 %v1067_v63, %v1005_v1 }
 0x628   :  { %v1016_v59 = vmax.f32 %v1012_v2, 0.0  ;;  %v1017_v60 = vmax.f32 %v1013_v4, 0.0  ;;  %v1018_v61 = vmax.f32 %v1014_v45, 0.0  ;;  %v1019_v62 = vmax.f32 %v1015_v48, 0.0 }
 0x62a   :  { %1020 = vst [vmem:[%s1991_s10] sm:$0xff] %v1016_v59  ;;  %1021 = vst [vmem:[%s1991_s10 + $0x8] sm:$0xff] %v1017_v60 }
 0x62b   :  { %1022 = vst [vmem:[%s1991_s10 + $0x10] sm:$0xff] %v1018_v61  ;;  %1023 = vst [vmem:[%s1991_s10 + $0x18] sm:$0xff] %v1019_v62 }

</bundles_post_ra>
